<compile_context>
chip_gen: v6e
topology: v6e:2x2x1
jax: 0.10.0
libtpu: 0.0.40
codegen_flags: <defaults>
</compile_context>

<pallas_src>
import jax
import jax.numpy as jnp
from jax import lax
from jax.experimental import pallas as pl
from jax.experimental.pallas import tpu as pltpu

_EPS = 1e-5  # nn.GroupNorm default eps


def _block_kernel(xp_ref, t_ref, b_ref, gamma_ref, beta_ref,
                  gl_ref, glt_ref, she_ref, sho_ref, out_ref):
    """Fused Conv3x3(pad=1) -> SiLU -> GroupNorm -> MaxPool2x2 for one sample.

    xp_ref   : (1, H+2, (W+2)*Cin)  zero-padded input, (Wp,Cin) flattened into lanes
    t_ref    : (3, (W+2)*Cin, W*Cout) block-Toeplitz conv weights (permuted columns)
    b_ref, gamma_ref, beta_ref : (1, W*Cout) per-lane conv bias / GN affine params
    gl_ref   : (W*Cout, G)  one-hot lane -> group matrix
    glt_ref  : (G, W*Cout)  its transpose
    she_ref, sho_ref : (H/2, H) 0/1 even/odd row-selection matrices
    out_ref  : (1, H/2, (W/2)*Cout) pooled output (lane-dense)
    """
    KH = t_ref.shape[0]
    H = she_ref.shape[1]
    L = t_ref.shape[2]            # W * Cout  (256)
    G = gl_ref.shape[1]
    Lh = out_ref.shape[2]         # (W/2) * Cout  (128)
    inv_cnt = 1.0 / (H * L / G)   # 1 / (H * W * Cout/G)  per-group element count

    # ---- conv 3x3 (pad 1): KH block-Toeplitz matmuls, lane-dense result ------
    acc = jnp.dot(xp_ref[0, 0:H, :], t_ref[0],
                  preferred_element_type=jnp.float32)            # (H, L)
    for kh in range(1, KH):
        acc = acc + jnp.dot(xp_ref[0, kh:kh + H, :], t_ref[kh],
                            preferred_element_type=jnp.float32)
    z = acc + b_ref[...]

    # ---- SiLU (exp goes to the EUP slot) --------------------------------------
    act = z * (1.0 / (1.0 + jnp.exp(-z)))                        # (H, L)

    # ---- GroupNorm: two-pass mean / centered variance (robust) ---------------
    col_sum = jnp.sum(act, axis=0, keepdims=True)                # (1, L)
    mean_g = jnp.dot(col_sum, gl_ref[...],
                     preferred_element_type=jnp.float32) * inv_cnt   # (1, G)
    mean_l = jnp.dot(mean_g, glt_ref[...],
                     preferred_element_type=jnp.float32)             # (1, L)
    d = act - mean_l                                                  # centered
    sq_sum = jnp.sum(d * d, axis=0, keepdims=True)               # (1, L)
    var_g = jnp.dot(sq_sum, gl_ref[...],
                    preferred_element_type=jnp.float32) * inv_cnt    # (1, G)
    var_l = jnp.dot(var_g, glt_ref[...],
                    preferred_element_type=jnp.float32)              # (1, L)
    scale = gamma_ref[...] * lax.rsqrt(var_l + _EPS)             # (1, L)
    y = d * scale + beta_ref[...]                                # (H, L)

    # ---- MaxPool 2x2 ----------------------------------------------------------
    # rows: even/odd H selection via 0/1 matmuls (exact copies)
    y_even = jnp.dot(she_ref[...], y, preferred_element_type=jnp.float32)  # (H/2, L)
    y_odd = jnp.dot(sho_ref[...], y, preferred_element_type=jnp.float32)   # (H/2, L)
    hmax = jnp.maximum(y_even, y_odd)
    # cols: even-w pixels live in lanes [0:Lh), odd-w pixels in lanes [Lh:2*Lh)
    out_ref[0] = jnp.maximum(hmax[:, :Lh], hmax[:, Lh:])         # (H/2, Lh), one store


def block_forward(x_nchw, w_hwio, b, gamma, beta, num_groups):
    """x_nchw: (N, Cin, H, W) f32 -> (N, Cout, H//2, W//2) f32 (matches PyTorch)."""
    N, Cin, H, W = x_nchw.shape
    KH, KW, _, Cout = w_hwio.shape
    G = num_groups
    assert H % 2 == 0 and W % 2 == 0 and Cout % G == 0
    H2, W2 = H // 2, W // 2
    Hp, Wp = H + KH - 1, W + KW - 1
    L = W * Cout                   # conv-output lane width (256)
    Lh = W2 * Cout                 # pooled lane width (128)

    # ---- input: NCHW -> NHWC -> zero pad -> flatten (Wp, Cin) into the lane axis
    x = jnp.transpose(x_nchw, (0, 2, 3, 1))
    xp = jnp.pad(x, ((0, 0), (1, 1), (1, 1), (0, 0)))
    xp_flat = xp.reshape(N, Hp, Wp * Cin).astype(jnp.float32)    # (N, 18, 72)

    # ---- output lane order: l = parity*Lh + j*Cout + c  with  w = 2*j + parity
    l = jnp.arange(L)
    parity = l // Lh
    j = (l % Lh) // Cout
    c = l % Cout
    w_of_l = 2 * j + parity

    # ---- block-Toeplitz conv weights:
    #      T[kh, wp*Cin+ci, l] = w[kh, wp - w(l), ci, c(l)]  if 0 <= wp - w(l) < KW
    wp_i = jnp.arange(Wp)
    kw = wp_i[:, None] - jnp.arange(W)[None, :]                  # (Wp, W)
    valid = (kw >= 0) & (kw < KW)
    g = w_hwio[:, jnp.clip(kw, 0, KW - 1), :, :]                 # (KH, Wp, W, Cin, Cout)
    g = jnp.where(valid[None, :, :, None, None], g, 0.0)
    T_nat = jnp.transpose(g, (0, 1, 3, 2, 4)).reshape(KH, Wp * Cin, W * Cout)
    perm = w_of_l * Cout + c                                     # new lane <- natural lane
    T = T_nat[:, :, perm].astype(jnp.float32)                    # (KH, Wp*Cin, L)

    # ---- per-lane params (depend only on channel c = l % Cout)
    b_l = b[c].reshape(1, L).astype(jnp.float32)
    gamma_l = gamma[c].reshape(1, L).astype(jnp.float32)
    beta_l = beta[c].reshape(1, L).astype(jnp.float32)

    # ---- lane -> group one-hot (GroupNorm stats) and its transpose
    grp = c // (Cout // G)
    gmapL = (grp[:, None] == jnp.arange(G)[None, :]).astype(jnp.float32)   # (L, G)
    gmapLT = gmapL.T                                                       # (G, L)

    # ---- even/odd row-selection matrices for the H pooling
    hh = jnp.arange(H)
    ii = jnp.arange(H2)
    s_he = (hh[None, :] == (2 * ii)[:, None]).astype(jnp.float32)          # (H2, H)
    s_ho = (hh[None, :] == (2 * ii + 1)[:, None]).astype(jnp.float32)      # (H2, H)

    out_ld = pl.pallas_call(
        _block_kernel,
        out_shape=jax.ShapeDtypeStruct((N, H2, Lh), jnp.float32),
        grid=(N,),
        in_specs=[
            pl.BlockSpec((1, Hp, Wp * Cin), lambda n: (n, 0, 0)),
            pl.BlockSpec((KH, Wp * Cin, L), lambda n: (0, 0, 0)),
            pl.BlockSpec((1, L), lambda n: (0, 0)),
            pl.BlockSpec((1, L), lambda n: (0, 0)),
            pl.BlockSpec((1, L), lambda n: (0, 0)),
            pl.BlockSpec((L, G), lambda n: (0, 0)),
            pl.BlockSpec((G, L), lambda n: (0, 0)),
            pl.BlockSpec((H2, H), lambda n: (0, 0)),
            pl.BlockSpec((H2, H), lambda n: (0, 0)),
        ],
        out_specs=pl.BlockSpec((1, H2, Lh), lambda n: (n, 0, 0)),
        compiler_params=pltpu.CompilerParams(dimension_semantics=("parallel",)),
    )(xp_flat, T, b_l, gamma_l, beta_l, gmapL, gmapLT, s_he, s_ho)

    # lane l = j*Cout + c  ->  (N, H2, W2, Cout)  ->  NCHW
    out = out_ld.reshape(N, H2, W2, Cout)
    return jnp.transpose(out, (0, 3, 1, 2))


def _reference_forward(x_nchw, w_hwio, b, gamma, beta, num_groups):
    """Pure-JAX reference mirroring the PyTorch module (for validation)."""
    y = lax.conv_general_dilated(
        x_nchw, w_hwio, window_strides=(1, 1), padding=((1, 1), (1, 1)),
        dimension_numbers=("NCHW", "HWIO", "NCHW"))
    y = y + b[None, :, None, None]
    y = y * jax.nn.sigmoid(y)                                    # SiLU
    N, C, H, W = y.shape
    G = num_groups
    yg = y.reshape(N, G, C // G, H, W)
    mean = yg.mean(axis=(2, 3, 4), keepdims=True)
    var = yg.var(axis=(2, 3, 4), keepdims=True)
    yn = (yg - mean) / jnp.sqrt(var + _EPS)
    yn = yn.reshape(N, C, H, W) * gamma[None, :, None, None] + beta[None, :, None, None]
    return yn.reshape(N, C, H // 2, 2, W // 2, 2).max(axis=(3, 5))


if __name__ == "__main__":
    # Block(in_channels=4, out_channels=16, norm_groups=8, down_sample=True)
    N, Cin, H, W = 2, 4, 16, 16
    Cout, G = 16, 8

    key = jax.random.PRNGKey(0)
    kx, kw, kb, kg, kbt = jax.random.split(key, 5)
    x = jax.random.normal(kx, (N, Cin, H, W), jnp.float32)
    w = 0.1 * jax.random.normal(kw, (3, 3, Cin, Cout), jnp.float32)   # HWIO
    b = 0.1 * jax.random.normal(kb, (Cout,), jnp.float32)
    gamma = 1.0 + 0.1 * jax.random.normal(kg, (Cout,), jnp.float32)
    beta = 0.1 * jax.random.normal(kbt, (Cout,), jnp.float32)

    out = jax.block_until_ready(block_forward(x, w, b, gamma, beta, G))

    ref = _reference_forward(x, w, b, gamma, beta, G)
    assert out.shape == ref.shape == (N, Cout, H // 2, W // 2)
    err = float(jnp.max(jnp.abs(out - ref)))
    assert err < 5e-3, f"mismatch vs reference: max abs err = {err}"
    print("KERNEL_OK")
</pallas_src>

<mosaic_0001>
module attributes {stable_mosaic.version = 11 : i64} {
  func.func @_block_kernel(%arg0: i32, %arg1: memref<1x18x72xf32, #tpu.memory_space<vmem>>, %arg2: memref<3x72x256xf32, #tpu.memory_space<vmem>>, %arg3: memref<1x256xf32, #tpu.memory_space<vmem>>, %arg4: memref<1x256xf32, #tpu.memory_space<vmem>>, %arg5: memref<1x256xf32, #tpu.memory_space<vmem>>, %arg6: memref<256x8xf32, #tpu.memory_space<vmem>>, %arg7: memref<8x256xf32, #tpu.memory_space<vmem>>, %arg8: memref<8x16xf32, #tpu.memory_space<vmem>>, %arg9: memref<8x16xf32, #tpu.memory_space<vmem>>, %arg10: memref<1x8x128xf32, #tpu.memory_space<vmem>>) attributes {dimension_semantics = [#tpu.dimension_semantics<parallel>], iteration_bounds = array<i64: 2>, scalar_prefetch = 0 : i64, scratch_operands = 0 : i64, tpu.core_type = #tpu.core_type<tc>, window_params = [{transform_indices = @transform_0, window_bounds = array<i64: 1, 18, 72>}, {pipeline_mode = #tpu.pipeline_mode<synchronous>, transform_indices = @transform_1, window_bounds = array<i64: 3, 72, 256>}, {pipeline_mode = #tpu.pipeline_mode<synchronous>, transform_indices = @transform_2, window_bounds = array<i64: 1, 256>}, {pipeline_mode = #tpu.pipeline_mode<synchronous>, transform_indices = @transform_3, window_bounds = array<i64: 1, 256>}, {pipeline_mode = #tpu.pipeline_mode<synchronous>, transform_indices = @transform_4, window_bounds = array<i64: 1, 256>}, {pipeline_mode = #tpu.pipeline_mode<synchronous>, transform_indices = @transform_5, window_bounds = array<i64: 256, 8>}, {pipeline_mode = #tpu.pipeline_mode<synchronous>, transform_indices = @transform_6, window_bounds = array<i64: 8, 256>}, {pipeline_mode = #tpu.pipeline_mode<synchronous>, transform_indices = @transform_7, window_bounds = array<i64: 8, 16>}, {pipeline_mode = #tpu.pipeline_mode<synchronous>, transform_indices = @transform_8, window_bounds = array<i64: 8, 16>}, {transform_indices = @transform_9, window_bounds = array<i64: 1, 8, 128>}]} {
    %c0 = arith.constant 0 : index
    %c0_0 = arith.constant 0 : index
    %c0_1 = arith.constant 0 : index
    %0 = vector.load %arg1[%c0, %c0_0, %c0_1] : memref<1x18x72xf32, #tpu.memory_space<vmem>>, vector<1x16x72xf32>
    %1 = vector.shape_cast %0 : vector<1x16x72xf32> to vector<16x72xf32>
    %c0_2 = arith.constant 0 : index
    %c0_3 = arith.constant 0 : index
    %c0_4 = arith.constant 0 : index
    %2 = vector.load %arg2[%c0_2, %c0_3, %c0_4] : memref<3x72x256xf32, #tpu.memory_space<vmem>>, vector<1x72x256xf32>
    %3 = vector.shape_cast %2 : vector<1x72x256xf32> to vector<72x256xf32>
    %cst = arith.constant dense<0.000000e+00> : vector<16x256xf32>
    %4 = tpu.matmul %1, %3, %cst {dimension_numbers = #tpu.dot_dimension_numbers<[1], [0], [0], [1], [0, 0, 1, 1], [], []>} : vector<16x72xf32>, vector<72x256xf32>, vector<16x256xf32> -> vector<16x256xf32>
    %c0_5 = arith.constant 0 : index
    %c1 = arith.constant 1 : index
    %c0_6 = arith.constant 0 : index
    %5 = vector.load %arg1[%c0_5, %c1, %c0_6] : memref<1x18x72xf32, #tpu.memory_space<vmem>>, vector<1x16x72xf32>
    %6 = vector.shape_cast %5 : vector<1x16x72xf32> to vector<16x72xf32>
    %c1_7 = arith.constant 1 : index
    %c0_8 = arith.constant 0 : index
    %c0_9 = arith.constant 0 : index
    %7 = vector.load %arg2[%c1_7, %c0_8, %c0_9] : memref<3x72x256xf32, #tpu.memory_space<vmem>>, vector<1x72x256xf32>
    %8 = vector.shape_cast %7 : vector<1x72x256xf32> to vector<72x256xf32>
    %cst_10 = arith.constant dense<0.000000e+00> : vector<16x256xf32>
    %9 = tpu.matmul %6, %8, %cst_10 {dimension_numbers = #tpu.dot_dimension_numbers<[1], [0], [0], [1], [0, 0, 1, 1], [], []>} : vector<16x72xf32>, vector<72x256xf32>, vector<16x256xf32> -> vector<16x256xf32>
    %10 = arith.addf %4, %9 : vector<16x256xf32>
    %c0_11 = arith.constant 0 : index
    %c2 = arith.constant 2 : index
    %c0_12 = arith.constant 0 : index
    %11 = vector.load %arg1[%c0_11, %c2, %c0_12] : memref<1x18x72xf32, #tpu.memory_space<vmem>>, vector<1x16x72xf32>
    %12 = vector.shape_cast %11 : vector<1x16x72xf32> to vector<16x72xf32>
    %c2_13 = arith.constant 2 : index
    %c0_14 = arith.constant 0 : index
    %c0_15 = arith.constant 0 : index
    %13 = vector.load %arg2[%c2_13, %c0_14, %c0_15] : memref<3x72x256xf32, #tpu.memory_space<vmem>>, vector<1x72x256xf32>
    %14 = vector.shape_cast %13 : vector<1x72x256xf32> to vector<72x256xf32>
    %cst_16 = arith.constant dense<0.000000e+00> : vector<16x256xf32>
    %15 = tpu.matmul %12, %14, %cst_16 {dimension_numbers = #tpu.dot_dimension_numbers<[1], [0], [0], [1], [0, 0, 1, 1], [], []>} : vector<16x72xf32>, vector<72x256xf32>, vector<16x256xf32> -> vector<16x256xf32>
    %16 = arith.addf %10, %15 : vector<16x256xf32>
    %c0_17 = arith.constant 0 : index
    %c0_18 = arith.constant 0 : index
    %17 = vector.load %arg3[%c0_17, %c0_18] : memref<1x256xf32, #tpu.memory_space<vmem>>, vector<1x256xf32>
    %18 = vector.broadcast %17 : vector<1x256xf32> to vector<16x256xf32>
    %19 = arith.addf %16, %18 : vector<16x256xf32>
    %cst_19 = arith.constant 0.000000e+00 : f32
    %20 = vector.broadcast %cst_19 : f32 to vector<16x256xf32>
    %21 = arith.subf %20, %19 : vector<16x256xf32>
    %22 = math.exp %21 : vector<16x256xf32>
    %cst_20 = arith.constant 1.000000e+00 : f32
    %23 = vector.broadcast %cst_20 : f32 to vector<16x256xf32>
    %24 = arith.addf %23, %22 : vector<16x256xf32>
    %cst_21 = arith.constant 1.000000e+00 : f32
    %25 = vector.broadcast %cst_21 : f32 to vector<16x256xf32>
    %26 = arith.divf %25, %24 : vector<16x256xf32>
    %27 = arith.mulf %19, %26 : vector<16x256xf32>
    %cst_22 = arith.constant dense<0.000000e+00> : vector<256xf32>
    %28 = vector.multi_reduction <add>, %27, %cst_22 [0] : vector<16x256xf32> to vector<256xf32>
    %29 = vector.shape_cast %28 : vector<256xf32> to vector<1x256xf32>
    %c0_23 = arith.constant 0 : index
    %c0_24 = arith.constant 0 : index
    %30 = vector.load %arg6[%c0_23, %c0_24] : memref<256x8xf32, #tpu.memory_space<vmem>>, vector<256x8xf32>
    %cst_25 = arith.constant dense<0.000000e+00> : vector<1x8xf32>
    %31 = tpu.matmul %29, %30, %cst_25 {dimension_numbers = #tpu.dot_dimension_numbers<[1], [0], [0], [1], [0, 0, 1, 1], [], []>} : vector<1x256xf32>, vector<256x8xf32>, vector<1x8xf32> -> vector<1x8xf32>
    %cst_26 = arith.constant 0.001953125 : f32
    %32 = vector.broadcast %cst_26 : f32 to vector<1x8xf32>
    %33 = arith.mulf %31, %32 : vector<1x8xf32>
    %c0_27 = arith.constant 0 : index
    %c0_28 = arith.constant 0 : index
    %34 = vector.load %arg7[%c0_27, %c0_28] : memref<8x256xf32, #tpu.memory_space<vmem>>, vector<8x256xf32>
    %cst_29 = arith.constant dense<0.000000e+00> : vector<1x256xf32>
    %35 = tpu.matmul %33, %34, %cst_29 {dimension_numbers = #tpu.dot_dimension_numbers<[1], [0], [0], [1], [0, 0, 1, 1], [], []>} : vector<1x8xf32>, vector<8x256xf32>, vector<1x256xf32> -> vector<1x256xf32>
    %36 = vector.broadcast %35 : vector<1x256xf32> to vector<16x256xf32>
    %37 = arith.subf %27, %36 : vector<16x256xf32>
    %38 = arith.mulf %37, %37 : vector<16x256xf32>
    %cst_30 = arith.constant dense<0.000000e+00> : vector<256xf32>
    %39 = vector.multi_reduction <add>, %38, %cst_30 [0] : vector<16x256xf32> to vector<256xf32>
    %40 = vector.shape_cast %39 : vector<256xf32> to vector<1x256xf32>
    %c0_31 = arith.constant 0 : index
    %c0_32 = arith.constant 0 : index
    %41 = vector.load %arg6[%c0_31, %c0_32] : memref<256x8xf32, #tpu.memory_space<vmem>>, vector<256x8xf32>
    %cst_33 = arith.constant dense<0.000000e+00> : vector<1x8xf32>
    %42 = tpu.matmul %40, %41, %cst_33 {dimension_numbers = #tpu.dot_dimension_numbers<[1], [0], [0], [1], [0, 0, 1, 1], [], []>} : vector<1x256xf32>, vector<256x8xf32>, vector<1x8xf32> -> vector<1x8xf32>
    %cst_34 = arith.constant 0.001953125 : f32
    %43 = vector.broadcast %cst_34 : f32 to vector<1x8xf32>
    %44 = arith.mulf %42, %43 : vector<1x8xf32>
    %c0_35 = arith.constant 0 : index
    %c0_36 = arith.constant 0 : index
    %45 = vector.load %arg7[%c0_35, %c0_36] : memref<8x256xf32, #tpu.memory_space<vmem>>, vector<8x256xf32>
    %cst_37 = arith.constant dense<0.000000e+00> : vector<1x256xf32>
    %46 = tpu.matmul %44, %45, %cst_37 {dimension_numbers = #tpu.dot_dimension_numbers<[1], [0], [0], [1], [0, 0, 1, 1], [], []>} : vector<1x8xf32>, vector<8x256xf32>, vector<1x256xf32> -> vector<1x256xf32>
    %c0_38 = arith.constant 0 : index
    %c0_39 = arith.constant 0 : index
    %47 = vector.load %arg4[%c0_38, %c0_39] : memref<1x256xf32, #tpu.memory_space<vmem>>, vector<1x256xf32>
    %cst_40 = arith.constant 9.99999974E-6 : f32
    %48 = vector.broadcast %cst_40 : f32 to vector<1x256xf32>
    %49 = arith.addf %46, %48 : vector<1x256xf32>
    %50 = math.rsqrt %49 : vector<1x256xf32>
    %51 = arith.mulf %47, %50 : vector<1x256xf32>
    %52 = vector.broadcast %51 : vector<1x256xf32> to vector<16x256xf32>
    %53 = arith.mulf %37, %52 : vector<16x256xf32>
    %c0_41 = arith.constant 0 : index
    %c0_42 = arith.constant 0 : index
    %54 = vector.load %arg5[%c0_41, %c0_42] : memref<1x256xf32, #tpu.memory_space<vmem>>, vector<1x256xf32>
    %55 = vector.broadcast %54 : vector<1x256xf32> to vector<16x256xf32>
    %56 = arith.addf %53, %55 : vector<16x256xf32>
    %c0_43 = arith.constant 0 : index
    %c0_44 = arith.constant 0 : index
    %57 = vector.load %arg8[%c0_43, %c0_44] : memref<8x16xf32, #tpu.memory_space<vmem>>, vector<8x16xf32>
    %cst_45 = arith.constant dense<0.000000e+00> : vector<8x256xf32>
    %58 = tpu.matmul %57, %56, %cst_45 {dimension_numbers = #tpu.dot_dimension_numbers<[1], [0], [0], [1], [0, 0, 1, 1], [], []>} : vector<8x16xf32>, vector<16x256xf32>, vector<8x256xf32> -> vector<8x256xf32>
    %c0_46 = arith.constant 0 : index
    %c0_47 = arith.constant 0 : index
    %59 = vector.load %arg9[%c0_46, %c0_47] : memref<8x16xf32, #tpu.memory_space<vmem>>, vector<8x16xf32>
    %cst_48 = arith.constant dense<0.000000e+00> : vector<8x256xf32>
    %60 = tpu.matmul %59, %56, %cst_48 {dimension_numbers = #tpu.dot_dimension_numbers<[1], [0], [0], [1], [0, 0, 1, 1], [], []>} : vector<8x16xf32>, vector<16x256xf32>, vector<8x256xf32> -> vector<8x256xf32>
    %61 = arith.maximumf %58, %60 : vector<8x256xf32>
    %62 = vector.extract_strided_slice %61 {offsets = [0, 0], sizes = [8, 128], strides = [1, 1]} : vector<8x256xf32> to vector<8x128xf32>
    %63 = vector.extract_strided_slice %61 {offsets = [0, 128], sizes = [8, 128], strides = [1, 1]} : vector<8x256xf32> to vector<8x128xf32>
    %64 = arith.maximumf %62, %63 : vector<8x128xf32>
    %c0_49 = arith.constant 0 : index
    %c0_50 = arith.constant 0 : index
    %c0_51 = arith.constant 0 : index
    %65 = vector.load %arg10[%c0_49, %c0_50, %c0_51] : memref<1x8x128xf32, #tpu.memory_space<vmem>>, vector<1x8x128xf32>
    %66 = vector.shape_cast %65 : vector<1x8x128xf32> to vector<8x128xf32>
    %67 = vector.shape_cast %64 : vector<8x128xf32> to vector<1x8x128xf32>
    tpu.vector_store %arg10[%c0_49, %c0_50, %c0_51], %67 {strides = array<i32>} : memref<1x8x128xf32, #tpu.memory_space<vmem>>, vector<1x8x128xf32>,
    return
  }
  func.func @transform_0(%arg0: i32) -> (i32, i32, i32) {
    %c0_i32 = arith.constant 0 : i32
    %c0_i32_0 = arith.constant 0 : i32
    %c0_i32_1 = arith.constant 0 : i32
    return %arg0, %c0_i32, %c0_i32_0 : i32, i32, i32
  }
  func.func @transform_1(%arg0: i32) -> (i32, i32, i32) {
    %c0_i32 = arith.constant 0 : i32
    %c0_i32_0 = arith.constant 0 : i32
    %c0_i32_1 = arith.constant 0 : i32
    %c0_i32_2 = arith.constant 0 : i32
    return %c0_i32, %c0_i32_0, %c0_i32_1 : i32, i32, i32
  }
  func.func @transform_2(%arg0: i32) -> (i32, i32) {
    %c0_i32 = arith.constant 0 : i32
    %c0_i32_0 = arith.constant 0 : i32
    %c0_i32_1 = arith.constant 0 : i32
    return %c0_i32, %c0_i32_0 : i32, i32
  }
  func.func @transform_3(%arg0: i32) -> (i32, i32) {
    %c0_i32 = arith.constant 0 : i32
    %c0_i32_0 = arith.constant 0 : i32
    %c0_i32_1 = arith.constant 0 : i32
    return %c0_i32, %c0_i32_0 : i32, i32
  }
  func.func @transform_4(%arg0: i32) -> (i32, i32) {
    %c0_i32 = arith.constant 0 : i32
    %c0_i32_0 = arith.constant 0 : i32
    %c0_i32_1 = arith.constant 0 : i32
    return %c0_i32, %c0_i32_0 : i32, i32
  }
  func.func @transform_5(%arg0: i32) -> (i32, i32) {
    %c0_i32 = arith.constant 0 : i32
    %c0_i32_0 = arith.constant 0 : i32
    %c0_i32_1 = arith.constant 0 : i32
    return %c0_i32, %c0_i32_0 : i32, i32
  }
  func.func @transform_6(%arg0: i32) -> (i32, i32) {
    %c0_i32 = arith.constant 0 : i32
    %c0_i32_0 = arith.constant 0 : i32
    %c0_i32_1 = arith.constant 0 : i32
    return %c0_i32, %c0_i32_0 : i32, i32
  }
  func.func @transform_7(%arg0: i32) -> (i32, i32) {
    %c0_i32 = arith.constant 0 : i32
    %c0_i32_0 = arith.constant 0 : i32
    %c0_i32_1 = arith.constant 0 : i32
    return %c0_i32, %c0_i32_0 : i32, i32
  }
  func.func @transform_8(%arg0: i32) -> (i32, i32) {
    %c0_i32 = arith.constant 0 : i32
    %c0_i32_0 = arith.constant 0 : i32
    %c0_i32_1 = arith.constant 0 : i32
    return %c0_i32, %c0_i32_0 : i32, i32
  }
  func.func @transform_9(%arg0: i32) -> (i32, i32, i32) {
    %c0_i32 = arith.constant 0 : i32
    %c0_i32_0 = arith.constant 0 : i32
    %c0_i32_1 = arith.constant 0 : i32
    return %arg0, %c0_i32, %c0_i32_0 : i32, i32, i32
  }
}

</mosaic_0001>

<bundles_post_ra>
// kernel: tpu_custom_call.1
= control target key start
LH: loop header
LB: loop body
LE: loop exit
PB: predicated region body
PF: predicated region fallthrough
CT: control target
= control target key end

     0   :  { %14 = vsyncpa [#allocation3], 0  ;;  %s1953_s0 = inlined_call_operand.vmem [shape: f32[2,18,72], index: 0, kind: input, shape index: {}]   ;;  %s1954_s1 = inlined_call_operand.hbm [shape: f32[3,72,256], index: 1, kind: input, shape index: {}]   ;;  %s1955_s2 = inlined_call_operand.vmem [shape: f32[1,256], index: 2, kind: input, shape index: {}]   ;;  %s1956_s3 = inlined_call_operand.vmem [shape: f32[1,256], index: 3, kind: input, shape index: {}]   ;;  %s1957_s4 = inlined_call_operand.vmem [shape: f32[1,256], index: 4, kind: input, shape index: {}]   ;;  %s1958_s5 = inlined_call_operand.vmem [shape: f32[256,8], index: 5, kind: input, shape index: {}]   ;;  %s1959_s6 = inlined_call_operand.vmem [shape: f32[8,256], index: 6, kind: input, shape index: {}]   ;;  %s1960_s7 = inlined_call_operand.vmem [shape: f32[8,16], index: 7, kind: input, shape index: {}]   ;;  %s1961_s8 = inlined_call_operand.vmem [shape: f32[8,16], index: 8, kind: input, shape index: {}]   ;;  %s1962_s9 = inlined_call_operand.hbm [shape: f32[2,8,128], index: 9, kind: output, shape index: {}]  }
   0x1   :  { %15 = vsyncpa [#allocation4], 0 }
   0x2   :  { %17 = vsyncpa [#allocation4 + $0x1], 0  ;;  %s1683_s30 = smov 0   ;;  %s1685_s10 = smov 0  }
   0x3   :  { %s1687_s11 = smov 0   ;;  %s1689_s12 = smov 0  }
   0x4 LB: > { %s1704_s13 = sadd.s32 4294967295, %s1625_s12   ;;  %s1368_s14 = sadd.s32 4294967294, %s1625_s12   ;;  %s1625_s12 = sphi %s1689_s12, %s1970_s12   ;;  %s1621_s11 = sphi %s1687_s11, %s1969_s11   ;;  %s1617_s10 = sphi %s1685_s10, %s1968_s10   ;;  %s1613_s30 = sphi %s1683_s30, %s1967_s30  }
   0x5   : > { %s1708_s15 = sadd.s32 1, %s1625_s12   ;;  %s224_s16 = sadd.s32 1, %s1621_s11 }
   0x6   : > { %s221_s17 = ssub.s32 %s1625_s12, %s1708_s15  ;;  %p234_p0 = scmp.ne.s32.totalorder %s1621_s11, %s1617_s10 }
   0x7   : > { %p222_p1 = scmp.eq.s32.totalorder %s221_s17, 0  ;;  %p235_p2 = scmp.eq.s32.totalorder %s1704_s13, 1 }
   0x8   : > { %p240_p3 = scmp.ne.s32.totalorder %s1617_s10, %s1613_s30  ;;  %p241_p4 = scmp.eq.s32.totalorder %s1368_s14, 1 }
   0x9   : > { %s1719_s18 = scalar_select %p222_p1, %s1621_s11, %s224_s16  }
   0xa   : > { %p1721_p5 = por %p235_p2, %p234_p0  ;;  %p1725_p6 = por %p241_p4, %p240_p3 }
   0xb   : > { %p1369_p7 = scmp.ge.s32.totalorder %s1625_s12, 1  ;;  %p248_p8 = scmp.lt.s32.totalorder %s1625_s12, 3 }
   0xc   : > { %s1964_s20 = scalar_select %p1725_p6, 1, 0 }
   0xd   : > { %p1475_p9 = scmp.eq.s32.totalorder %s1704_s13, 0  ;;  %p1732_p10 = pnand %p1369_p7, %p248_p8 }
   0xe   : > { %s1627_s22 = smov [#allocation2]  }
   0xf   : > { %s260_s23 = sshll.u32 %s1627_s22, 4  ;;  %p1467_p11 = pneg %p1732_p10  ;;  %s261_s23 = int_to_ptr.vmem [resolvable:$true] %s260_s23 }
  0x10   : > { %s1546_s24 = scalar_lea.vmem %s261_s23, 6912  ;;  %p1554_p3 = scmp.lt.s32.totalorder %s261_s23, %s261_s23 }
  0x11   : > { %p1468_p12 = pnand %p1475_p9, %p1467_p11  ;;  %p1547_p0 = scmp.ne.s32.totalorder %s261_s23, %s1546_s24 }
  0x12   : > { %p1555_p4 = scmp.lt.s32.totalorder %s1546_s24, %s1546_s24 }
  0x13   : > { %p1537_p13 = pneg %p1468_p12 }
  0x14   : > { %p1556_p6 = por %p1555_p4, %p1554_p3 }
  0x15   : > { %p1549_p1 = pnand %p1547_p0, %p1537_p13 }
  0x17   : > { %p1550_p2 = pneg %p1549_p1 }
  0x19   : > { %p1557_p7 = pnand %p1556_p6, %p1550_p2 }
  0x1b   : > { %1560 = shalt.err (!%p1557_p7)
}
  0x1c   : > { %s1628_s25 = smov 256   ;;  %s1629_s26 = smov 16  }
  0x1d   : > { %1470 = dma.hbm_to_vmem [thread:$0]  (!%p1468_p12), %s1954_s1, 6912, %s261_s23, [#allocation3], %s1628_s25, %s1628_s25, %s1629_s26  }
  0x1e   : > { %305 = sbr.rel (%p1732_p10) target bundleno = 1388 (0x56c), region = 56 }
  0x23   : > { %1604 = dma.done.wait (%p1475_p9), [#allocation3], 6912  }
  0x24   : > { %1606 = vsyncadd (%p1475_p9), [#allocation3], 4294960384  ;;  %v1630_v0 = vmov 0.0   ;;  %v386_v1 = vld [vmem:[#allocation2 + $0x118] sm:$0xff]  ;;  %v365_v2 = vld [vmem:[#allocation2 + $0x88] sm:$0xff]  ;;  %p341_p6 = scmp.lt.s32.totalorder %s1704_s13, 1 }
  0x25   : > { %458 = vmatprep.mubr.f32.mxu0 %v1630_v0  ;;  %541 = vmatprep.mubr.f32.mxu1 %v1630_v0  ;;  %v385_v3 = vld [vmem:[#allocation2 + $0x110] sm:$0xff]  ;;  %v364_v4 = vld [vmem:[#allocation2 + $0x80] sm:$0xff]  ;;  %v384_v5 = vld [vmem:[#allocation2 + $0x108] sm:$0xff]  ;;  %vm387_vm0 = vcmask 588800   ;;  %vm825_vm1 = vcmask 64512   ;;  %vm1129_vm2 = vcmask 130048  }
  0x26   : > { %408 = vmatprep.subr.mxu0 %v386_v1  ;;  %491 = vmatprep.subr.mxu1 %v365_v2  ;;  %v363_v6 = vld [vmem:[#allocation2 + $0x78] sm:$0xff]  ;;  %v383_v7 = vld [vmem:[#allocation2 + $0x100] sm:$0xff]  ;;  %v362_v8 = vld [vmem:[#allocation2 + $0x70] sm:$0xff]  ;;  %s1755_s29 = scalar_select %p341_p6, %s1704_s13, 1 }
  0x27   : > { %409 = vmatpush1.msra.mxu0 %v385_v3  ;;  %492 = vmatpush1.msra.mxu1 %v364_v4  ;;  %v382_v9 = vld [vmem:[#allocation2 + $0xf8] sm:$0xff]  ;;  %v361_v10 = vld [vmem:[#allocation2 + $0x68] sm:$0xff]  ;;  %v381_v11 = vld [vmem:[#allocation2 + $0xf0] sm:$0xff]  ;;  %s338_s28 = sand.u32 1, %s1617_s10   ;;  %s1632_s26 = smov [#allocation5]  }
  0x28   : > { %410 = vmatprep.subr.mxu0 %v384_v5  ;;  %493 = vmatprep.subr.mxu1 %v363_v6  ;;  %v360_v12 = vld [vmem:[#allocation2 + $0x60] sm:$0xff]  ;;  %v380_v13 = vld [vmem:[#allocation2 + $0xe8] sm:$0xff]  ;;  %v359_v14 = vld [vmem:[#allocation2 + $0x58] sm:$0xff]  ;;  %s1460_s14 = smul.u32 24, %s1755_s29  ;;  %s1374_s29 = sshll.u32 %s338_s28, 3 }
  0x29   : > { %411 = vmatpush1.msra.mxu0 %v383_v7  ;;  %494 = vmatpush1.msra.mxu1 %v362_v8  ;;  %v379_v15 = vld [vmem:[#allocation2 + $0xe0] sm:$0xff]  ;;  %v358_v16 = vld [vmem:[#allocation2 + $0x50] sm:$0xff]  ;;  %v378_v17 = vld [vmem:[#allocation2 + $0xd8] sm:$0xff]  ;;  %s340_s16 = scalar_lea.vmem [#allocation5], %s1374_s29  ;;  %s1284_s24 = scalar_lea.sflag [#allocation4], %s338_s28 }
  0x2a   : > { %412 = vmatprep.subr.mxu0 %v382_v9  ;;  %495 = vmatprep.subr.mxu1 %v361_v10  ;;  %v357_v18 = vld [vmem:[#allocation2 + $0x48] sm:$0xff]  ;;  %v377_v19 = vld [vmem:[#allocation2 + $0xd0] sm:$0xff]  ;;  %v356_v20 = vld [vmem:[#allocation2 + $0x40] sm:$0xff]  ;;  %s1761_s21 = scalar_lea.vmem %s1953_s0, %s1460_s14  ;;  %s1387_s14 = sshll.u32 %s1704_s13, 7 }
  0x2b   : > { %413 = vmatpush1.msra.mxu0 %v381_v11  ;;  %496 = vmatpush1.msra.mxu1 %v360_v12  ;;  %v376_v21 = vld [vmem:[#allocation2 + $0xc8] sm:$0xff]  ;;  %v355_v22 = vld [vmem:[#allocation2 + $0x38] sm:$0xff]  ;;  %v375_v23 = vld [vmem:[#allocation2 + $0xc0] sm:$0xff]  ;;  %s1297_s17 = sshll.u32 %s340_s16, 4  ;;  %s1295_s23 = scalar_lea.hbm %s1962_s9, %s1387_s14  ;;  %s1298_s17 = int_to_ptr.vmem [resolvable:$true] %s1297_s17 }
  0x2c   : > { %414 = vmatprep.subr.mxu0 %v380_v13  ;;  %497 = vmatprep.subr.mxu1 %v359_v14  ;;  %v354_v24 = vld [vmem:[#allocation2 + $0x30] sm:$0xff]  ;;  %v374_v25 = vld [vmem:[#allocation2 + $0xb8] sm:$0xff]  ;;  %v353_v26 = vld [vmem:[#allocation2 + $0x28] sm:$0xff]  ;;  %s1561_s25 = scalar_lea.vmem %s1298_s17, 128  ;;  %s1565_s27 = sshll.u32 %s1632_s26, 4  ;;  %s1566_s27 = int_to_ptr.vmem [resolvable:$false] %s1565_s27 }
  0x2d   : > { %415 = vmatpush1.msra.mxu0 %v379_v15  ;;  %498 = vmatpush1.msra.mxu1 %v358_v16  ;;  %v373_v27 = vld [vmem:[#allocation2 + $0xb0] sm:$0xff]  ;;  %v352_v28 = vld [vmem:[#allocation2 + $0x20] sm:$0xff]  ;;  %v372_v29 = vld [vmem:[#allocation2 + $0xa8] sm:$0xff]  ;;  %p1562_p8 = scmp.ne.s32.totalorder %s1298_s17, %s1561_s25  ;;  %s1567_s13 = scalar_lea.vmem %s1566_s27, 256 }
  0x2e   : > { %416 = vmatprep.subr.mxu0 %v378_v17  ;;  %499 = vmatprep.subr.mxu1 %v357_v18  ;;  %v351_v30 = vld [vmem:[#allocation2 + $0x18] sm:$0xff]  ;;  %v371_v31 = vld [vmem:[#allocation2 + $0xa0] sm:$0xff]  ;;  %v350_v32 = vld [vmem:[#allocation2 + $0x10] sm:$0xff]  ;;  %p1568_p11 = scmp.lt.s32.totalorder %s1298_s17, %s1566_s27  ;;  %p1569_p12 = scmp.lt.s32.totalorder %s1567_s13, %s1561_s25 }
  0x2f   : > { %417 = vmatpush1.msra.mxu0 %v377_v19  ;;  %500 = vmatpush1.msra.mxu1 %v356_v20  ;;  %v370_v33 = vld [vmem:[#allocation2 + $0x98] sm:$0xff]  ;;  %v349_v34 = vld [vmem:[#allocation2 + $0x8] sm:$0xff]  ;;  %v369_v35 = vld [vmem:[#allocation2 + $0x90] sm:$0xff]  ;;  %p1563_p9 = pnand %p1562_p8, %p1721_p5 }
  0x30   : > { %418 = vmatprep.subr.mxu0 %v376_v21  ;;  %501 = vmatprep.subr.mxu1 %v355_v22  ;;  %v348_v36 = vld [vmem:[#allocation2] sm:$0xff]  ;;  %v574_v39 = vld [vmem:[#allocation2 + $0x1a8] sm:$0xff]  ;;  %v572_v41 = vld [vmem:[#allocation2 + $0x198] sm:$0xff]  ;;  %p1570_p13 = por %p1569_p12, %p1568_p11 }
  0x31   : > { %419 = vmatpush1.msra.mxu0 %v375_v23  ;;  %502 = vmatpush1.msra.mxu1 %v354_v24  ;;  %v366_v37 = vld [vmem:[%s1761_s21 + $0x1] sm:$0xff]  ;;  %v571_v42 = vld [vmem:[#allocation2 + $0x190] sm:$0xff]  ;;  %v568_v47 = vld [vmem:[#allocation2 + $0x178] sm:$0xff]  ;;  %p1564_p10 = pneg %p1563_p9 }
  0x32   : > { %420 = vmatprep.subr.mxu0 %v374_v25  ;;  %503 = vmatprep.subr.mxu1 %v353_v26  ;;  %v346_v38 = vld [vmem:[%s1761_s21] sm:$0xff]  ;;  %v347_v43 = vld [vmem:[%s1761_s21 + $0x8] sm:$0xff]  ;;  %v567_v48 = vld [vmem:[#allocation2 + $0x170] sm:$0xff] }
  0x33   : > { %421 = vmatpush1.msra.mxu0 %v373_v27  ;;  %504 = vmatpush1.msra.mxu1 %v352_v28  ;;  %v573_v40 = vld [vmem:[#allocation2 + $0x1a0] sm:$0xff]  ;;  %v570_v44 = vld [vmem:[#allocation2 + $0x188] sm:$0xff]  ;;  %v564_v51 = vld [vmem:[#allocation2 + $0x158] sm:$0xff]  ;;  %p1571_p0 = pnand %p1570_p13, %p1564_p10 }
  0x34   : > { %422 = vmatprep.subr.mxu0 %v372_v29  ;;  %505 = vmatprep.subr.mxu1 %v351_v30  ;;  %v367_v45 = vld [vmem:[%s1761_s21 + $0x9] sm:$0xff]  ;;  %v569_v46 = vld [vmem:[#allocation2 + $0x180] sm:$0xff]  ;;  %v560_v55 = vld [vmem:[#allocation2 + $0x138] sm:$0xff]  ;;  %v664_v30 = vlaneseq }
  0x35   : > { %423 = vmatpush1.msra.mxu0 %v371_v31  ;;  %506 = vmatpush1.msra.mxu1 %v350_v32  ;;  %v566_v49 = vld [vmem:[#allocation2 + $0x168] sm:$0xff]  ;;  %v565_v50 = vld [vmem:[#allocation2 + $0x160] sm:$0xff]  ;;  %v563_v52 = vld [vmem:[#allocation2 + $0x150] sm:$0xff] }
  0x36   : > { %424 = vmatprep.subr.mxu0 %v370_v33  ;;  %507 = vmatprep.subr.mxu1 %v349_v34  ;;  %v562_v53 = vld [vmem:[#allocation2 + $0x148] sm:$0xff]  ;;  %v561_v54 = vld [vmem:[#allocation2 + $0x140] sm:$0xff]  ;;  %v559_v56 = vld [vmem:[#allocation2 + $0x130] sm:$0xff]  ;;  %v1875_v32 = vshrl.u32 %v664_v30, 7 }
  0x37   : > { %425 = vmatpush1.msra.mxu0 %v369_v35  ;;  %508 = vmatpush1.msra.mxu1 %v348_v36  ;;  %v558_v57 = vld [vmem:[#allocation2 + $0x128] sm:$0xff]  ;;  %v557_v58 = vld [vmem:[#allocation2 + $0x120] sm:$0xff]  ;;  %v751_v61 = vld [vmem:[%s1958_s5 + $0xf8] sm:$0xff] }
  0x38   : > { %1376 = vmatmul.mubr.msk.f32.vlgmr.msra.gmra.mxu0 %vm387_vm0, %v366_v37  ;;  %1378 = vmatmul.mubr.msk.f32.vlgmr.msra.gmra.mxu1 %vm387_vm0, %v346_v38  ;;  %v554_v59 = vld [vmem:[%s1761_s21 + $0x2] sm:$0xff]  ;;  %v555_v60 = vld [vmem:[%s1761_s21 + $0xa] sm:$0xff]  ;;  %v735_v62 = vld [vmem:[%s1958_s5 + $0x78] sm:$0xff]  ;;  %v1878_v36 = vsub.s32 0, %v1875_v32 }
  0x39   : > { %595 = vmatprep.subr.mxu0 %v574_v39  ;;  %464 = vmatprep.mubr.f32.mxu0 %v1630_v0  ;;  %v750_v63 = vld [vmem:[%s1958_s5 + $0xf0] sm:$0xff]  ;;  %v749_v2 = vld [vmem:[%s1958_s5 + $0xe8] sm:$0xff]  ;;  %v748_v4 = vld [vmem:[%s1958_s5 + $0xe0] sm:$0xff]  ;;  %v1884_v39 = vsub.s32 1, %v1875_v32 }
  0x3a   : > { %596 = vmatpush1.msra.mxu0 %v573_v40  ;;  %547 = vmatprep.mubr.f32.mxu1 %v1630_v0  ;;  %v734_v1 = vld [vmem:[%s1958_s5 + $0x70] sm:$0xff]  ;;  %v733_v3 = vld [vmem:[%s1958_s5 + $0x68] sm:$0xff]  ;;  %v732_v5 = vld [vmem:[%s1958_s5 + $0x60] sm:$0xff] }
  0x3b   : > { %597 = vmatprep.subr.mxu0 %v572_v41  ;;  %1390 = vmatprep.subr.mxu1 %v751_v61  ;;  %v747_v6 = vld [vmem:[%s1958_s5 + $0xd8] sm:$0xff]  ;;  %v746_v8 = vld [vmem:[%s1958_s5 + $0xd0] sm:$0xff]  ;;  %v745_v10 = vld [vmem:[%s1958_s5 + $0xc8] sm:$0xff] }
  0x3c   : > { %598 = vmatpush1.msra.mxu0 %v571_v42  ;;  %1379 = vmatmul.mubr.msk.f32.gmra.mxu1 %vm387_vm0, %v347_v43  ;;  %v731_v7 = vld [vmem:[%s1958_s5 + $0x58] sm:$0xff]  ;;  %v730_v9 = vld [vmem:[%s1958_s5 + $0x50] sm:$0xff]  ;;  %v729_v11 = vld [vmem:[%s1958_s5 + $0x48] sm:$0xff] }
  0x3d   : > { %599 = vmatprep.subr.mxu0 %v570_v44  ;;  %1377 = vmatmul.mubr.msk.f32.gmra.mxu0 %vm387_vm0, %v367_v45  ;;  %v744_v12 = vld [vmem:[%s1958_s5 + $0xc0] sm:$0xff]  ;;  %v743_v14 = vld [vmem:[%s1958_s5 + $0xb8] sm:$0xff]  ;;  %v742_v16 = vld [vmem:[%s1958_s5 + $0xb0] sm:$0xff] }
  0x3e   : > { %600 = vmatpush1.msra.mxu0 %v569_v46  ;;  %645 = vmatprep.mubr.f32.mxu0 %v1630_v0  ;;  %v728_v13 = vld [vmem:[%s1958_s5 + $0x40] sm:$0xff]  ;;  %v727_v15 = vld [vmem:[%s1958_s5 + $0x38] sm:$0xff]  ;;  %v726_v17 = vld [vmem:[%s1958_s5 + $0x30] sm:$0xff] }
  0x3f   : > { %601 = vmatprep.subr.mxu0 %v568_v47  ;;  %1391 = vmatpush3.msra.mxu1 %v735_v62  ;;  %v741_v18 = vld [vmem:[%s1958_s5 + $0xa8] sm:$0xff]  ;;  %v740_v20 = vld [vmem:[%s1958_s5 + $0xa0] sm:$0xff]  ;;  %v739_v22 = vld [vmem:[%s1958_s5 + $0x98] sm:$0xff] }
  0x40   : > { %602 = vmatpush1.msra.mxu0 %v567_v48  ;;  %1392 = vmatprep.subr.mxu1 %v750_v63  ;;  %v725_v19 = vld [vmem:[%s1958_s5 + $0x28] sm:$0xff]  ;;  %v724_v21 = vld [vmem:[%s1958_s5 + $0x20] sm:$0xff]  ;;  %v723_v23 = vld [vmem:[%s1958_s5 + $0x18] sm:$0xff] }
  0x41   : > { %603 = vmatprep.subr.mxu0 %v566_v49  ;;  %1393 = vmatpush3.msra.mxu1 %v734_v1  ;;  %v738_v24 = vld [vmem:[%s1958_s5 + $0x90] sm:$0xff]  ;;  %v737_v26 = vld [vmem:[%s1958_s5 + $0x88] sm:$0xff]  ;;  %v736_v28 = vld [vmem:[%s1958_s5 + $0x80] sm:$0xff] }
  0x42   : > { %604 = vmatpush1.msra.mxu0 %v565_v50  ;;  %1394 = vmatprep.subr.mxu1 %v749_v2  ;;  %v722_v25 = vld [vmem:[%s1958_s5 + $0x10] sm:$0xff]  ;;  %v721_v27 = vld [vmem:[%s1958_s5 + $0x8] sm:$0xff]  ;;  %v720_v29 = vld [vmem:[%s1958_s5] sm:$0xff] }
  0x43   : > { %605 = vmatprep.subr.mxu0 %v564_v51  ;;  %1395 = vmatpush3.msra.mxu1 %v733_v3  ;;  %v662_v38 = vld [vmem:[%s1955_s2] sm:$0x3] }
  0x44   : > { %606 = vmatpush1.msra.mxu0 %v563_v52  ;;  %1396 = vmatprep.subr.mxu1 %v748_v4  ;;  %v667_v43 = vrot.slane %v662_v38, %v1878_v36  ;;  %v671_v47 = vrot.slane %v662_v38, %v1884_v39  ;;  %v824_v38 = vld [vmem:[%s1959_s6 + $0x8] sm:$0xff] }
  0x45   : > { %607 = vmatprep.subr.mxu0 %v562_v53  ;;  %1397 = vmatpush3.msra.mxu1 %v732_v5 }
  0x46   : > { %608 = vmatpush1.msra.mxu0 %v561_v54  ;;  %1398 = vmatprep.subr.mxu1 %v747_v6 }
  0x47   : > { %609 = vmatprep.subr.mxu0 %v560_v55  ;;  %1399 = vmatpush3.msra.mxu1 %v731_v7 }
  0x48   : > { %610 = vmatpush1.msra.mxu0 %v559_v56  ;;  %1400 = vmatprep.subr.mxu1 %v746_v8 }
  0x49   : > { %611 = vmatprep.subr.mxu0 %v558_v57  ;;  %1401 = vmatpush3.msra.mxu1 %v730_v9 }
  0x4a   : > { %612 = vmatpush1.msra.mxu0 %v557_v58  ;;  %1402 = vmatprep.subr.mxu1 %v745_v10 }
  0x4b   : > { %1380 = vmatmul.mubr.msk.f32.vlgmr.msra.gmra.mxu0 %vm387_vm0, %v554_v59  ;;  %1425 = vmatprep.subr.mxu0 %v751_v61 }
  0x4c   : > { %651 = vmatprep.mubr.f32.mxu0 %v1630_v0  ;;  %1426 = vmatpush3.msra.mxu0 %v735_v62 }
  0x4d   : > { %1427 = vmatprep.subr.mxu0 %v750_v63  ;;  %1403 = vmatpush3.msra.mxu1 %v729_v11 }
  0x4e   : > { %1428 = vmatpush3.msra.mxu0 %v734_v1  ;;  %1404 = vmatprep.subr.mxu1 %v744_v12 }
  0x4f   : > { %1381 = vmatmul.mubr.msk.f32.gmra.mxu0 %vm387_vm0, %v555_v60  ;;  %1429 = vmatprep.subr.mxu0 %v749_v2 }
  0x50   : > { %1430 = vmatpush3.msra.mxu0 %v733_v3  ;;  %1405 = vmatpush3.msra.mxu1 %v728_v13 }
  0x51   : > { %1431 = vmatprep.subr.mxu0 %v748_v4  ;;  %1406 = vmatprep.subr.mxu1 %v743_v14 }
  0x52   : > { %1432 = vmatpush3.msra.mxu0 %v732_v5  ;;  %1407 = vmatpush3.msra.mxu1 %v727_v15 }
  0x53   : > { %1433 = vmatprep.subr.mxu0 %v747_v6  ;;  %1408 = vmatprep.subr.mxu1 %v742_v16 }
  0x54   : > { %1434 = vmatpush3.msra.mxu0 %v731_v7  ;;  %1409 = vmatpush3.msra.mxu1 %v726_v17 }
  0x55   : > { %1435 = vmatprep.subr.mxu0 %v746_v8  ;;  %1410 = vmatprep.subr.mxu1 %v741_v18 }
  0x56   : > { %1436 = vmatpush3.msra.mxu0 %v730_v9  ;;  %1411 = vmatpush3.msra.mxu1 %v725_v19 }
  0x57   : > { %1437 = vmatprep.subr.mxu0 %v745_v10  ;;  %1412 = vmatprep.subr.mxu1 %v740_v20 }
  0x58   : > { %1438 = vmatpush3.msra.mxu0 %v729_v11  ;;  %1413 = vmatpush3.msra.mxu1 %v724_v21 }
  0x59   : > { %1439 = vmatprep.subr.mxu0 %v744_v12  ;;  %1414 = vmatprep.subr.mxu1 %v739_v22 }
  0x5a   : > { %1440 = vmatpush3.msra.mxu0 %v728_v13  ;;  %1415 = vmatpush3.msra.mxu1 %v723_v23 }
  0x5b   : > { %1441 = vmatprep.subr.mxu0 %v743_v14  ;;  %1416 = vmatprep.subr.mxu1 %v738_v24 }
  0x5c   : > { %1442 = vmatpush3.msra.mxu0 %v727_v15  ;;  %1417 = vmatpush3.msra.mxu1 %v722_v25 }
  0x5d   : > { %1443 = vmatprep.subr.mxu0 %v742_v16  ;;  %1418 = vmatprep.subr.mxu1 %v737_v26 }
  0x5e   : > { %1444 = vmatpush3.msra.mxu0 %v726_v17  ;;  %1419 = vmatpush3.msra.mxu1 %v721_v27 }
  0x5f   : > { %1445 = vmatprep.subr.mxu0 %v741_v18  ;;  %1420 = vmatprep.subr.mxu1 %v736_v28 }
  0x60   : > { %1446 = vmatpush3.msra.mxu0 %v725_v19  ;;  %1421 = vmatpush3.msra.mxu1 %v720_v29 }
  0x61   : > { %1447 = vmatprep.subr.mxu0 %v740_v20  ;;  %859 = vmatprep.subr.mxu1 %v824_v38 }
  0x62   : > { %1448 = vmatpush3.msra.mxu0 %v724_v21 }
  0x63   : > { %1449 = vmatprep.subr.mxu0 %v739_v22 }
  0x64   : > { %1450 = vmatpush3.msra.mxu0 %v723_v23 }
  0x65   : > { %1451 = vmatprep.subr.mxu0 %v738_v24 }
  0x66   : > { %1452 = vmatpush3.msra.mxu0 %v722_v25 }
  0x67   : > { %1453 = vmatprep.subr.mxu0 %v737_v26 }
  0x68   : > { %1454 = vmatpush3.msra.mxu0 %v721_v27 }
  0x69   : > { %1455 = vmatprep.subr.mxu0 %v736_v28 }
  0x6a   : > { %1456 = vmatpush3.msra.mxu0 %v720_v29 }
  0xf8   : > { %v460_v31 = vpop.f32.mrf.mxu0  ;;  %v543_v33 = vpop.f32.mrf.mxu1 }
  0xf9   : > { %v544_v42 = vadd.f32 %v543_v33, %v460_v31 }
  0xfa   : > { %v462_v34 = vpop.f32.mrf.mxu0  ;;  %v545_v37 = vpop.f32.mrf.mxu1 }
  0xfb   : > { %v546_v45 = vadd.f32 %v545_v37, %v462_v34 }
  0xfc   : > { %v549_v40 = vpop.f32.mrf.mxu1 }
  0xfd   : > { %v466_v35 = vpop.f32.mrf.mxu0 }
  0xfe   : > { %v551_v48 = vpop.f32.mrf.mxu1  ;;  %v550_v50 = vadd.f32 %v549_v40, %v466_v35  ;;  %v823_v40 = vld [vmem:[%s1959_s6] sm:$0xff] }
  0xff   : > { %v468_v41 = vpop.f32.mrf.mxu0 }
 0x100   : > { %v552_v54 = vadd.f32 %v551_v48, %v468_v41 }
 0x10b   : > { %v647_v44 = vpop.f32.mrf.mxu0 }
 0x10c   : > { %v658_v46 = vadd.f32 %v647_v44, %v544_v42 }
 0x10d   : > { %v649_v49 = vpop.f32.mrf.mxu0 }
 0x10e   : > { %v674_v51 = vadd.f32 %v667_v43, %v658_v46  ;;  %v659_v52 = vadd.f32 %v649_v49, %v546_v45 }
 0x10f   : > { %v653_v53 = vpop.f32.mrf.mxu0 }
 0x110   : > { %v678_v55 = vsub.f32 0.0, %v674_v51  ;;  %v675_v56 = vadd.f32 %v671_v47, %v659_v52  ;;  %v660_v57 = vadd.f32 %v653_v53, %v550_v50 }
 0x111   : > { %v655_v58 = vpop.f32.mrf.mxu0 }
 0x112   : > { %v682_v59 = vmul.f32 1.442695, %v678_v55  ;;  %v679_v60 = vsub.f32 0.0, %v675_v56  ;;  %v676_v61 = vadd.f32 %v667_v43, %v660_v57  ;;  %v661_v62 = vadd.f32 %v655_v58, %v552_v54 }
 0x114   : > { %1515 = vpow2.f32 %v682_v59  ;;  %v684_v63 = vmul.f32 1.442695, %v679_v60  ;;  %v680_v1 = vsub.f32 0.0, %v676_v61  ;;  %v677_v2 = vadd.f32 %v671_v47, %v661_v62 }
 0x116   : > { %1517 = vpow2.f32 %v684_v63  ;;  %v686_v3 = vmul.f32 1.442695, %v680_v1  ;;  %v681_v4 = vsub.f32 0.0, %v677_v2 }
 0x118   : > { %1519 = vpow2.f32 %v686_v3  ;;  %v688_v5 = vmul.f32 1.442695, %v681_v4 }
 0x11a   : > { %1521 = vpow2.f32 %v688_v5 }
 0x121   : > { %v1516_v6 = vpop.eup %1515 }
 0x122   : > { %v690_v7 = vadd.f32 1.0, %v1516_v6 }
 0x123   : > { %v1518_v8 = vpop.eup %1517 }
 0x124   : > { %v691_v9 = vadd.f32 1.0, %v1518_v8  ;;  %1523 = vrcp.f32 %v690_v7 }
 0x125   : > { %v1520_v10 = vpop.eup %1519 }
 0x126   : > { %v692_v11 = vadd.f32 1.0, %v1520_v10  ;;  %1525 = vrcp.f32 %v691_v9 }
 0x127   : > { %v1522_v12 = vpop.eup %1521 }
 0x128   : > { %1527 = vrcp.f32 %v692_v11  ;;  %v693_v13 = vadd.f32 1.0, %v1522_v12 }
 0x12a   : > { %1529 = vrcp.f32 %v693_v13 }
 0x131   : > { %v1524_v14 = vpop.eup %1523 }
 0x132   : > { %v702_v17 = vmul.f32 %v1524_v14, %v674_v51 }
 0x133   : > { %v1526_v15 = vpop.eup %1525 }
 0x134   : > { %v703_v20 = vmul.f32 %v1526_v15, %v675_v56 }
 0x135   : > { %v1528_v16 = vpop.eup %1527 }
 0x136   : > { %v704_v18 = vmul.f32 %v1528_v16, %v676_v61  ;;  %v1631_v16 = vmov 1966171168  }
 0x137   : > { %v1530_v19 = vpop.eup %1529 }
 0x138   : > { %v706_v21 = vadd.f32 %v704_v18, %v702_v17  ;;  %v705_v22 = vmul.f32 %v1530_v19, %v677_v2 }
 0x13a   : > { %v707_v23 = vrot.slane %v706_v21, 4  ;;  %v713_v24 = vadd.f32 %v705_v22, %v703_v20 }
 0x13c   : > { %v708_v25 = vadd.f32 %v707_v23, %v706_v21  ;;  %v714_v26 = vrot.slane %v713_v24, 4 }
 0x13e   : > { %v709_v27 = vrot.slane %v708_v25, 2  ;;  %v715_v28 = vadd.f32 %v714_v26, %v713_v24  ;;  %v1001_v24 = vld [vmem:[%s1956_s3] sm:$0x3] }
 0x13f   : > { %v1112_v26 = vld [vmem:[%s1957_s4] sm:$0x3] }
 0x140   : > { %v710_v29 = vadd.f32 %v709_v27, %v708_v25  ;;  %v716_v30 = vrot.slane %v715_v28, 2 }
 0x142   : > { %v717_v31 = vadd.f32 %v716_v30, %v715_v28  ;;  %v711_v33 = vrot.slane %v710_v29, 1  ;;  %v1121_v30 = vrot.slane %v1112_v26, %v1884_v39 }
 0x144   : > { %v718_v34 = vrot.slane %v717_v31, 1  ;;  %v712_v37 = vadd.f32 %v711_v33, %v710_v29  ;;  %v1117_v29 = vrot.slane %v1112_v26, %v1878_v36 }
 0x146   : > { %v719_v35 = vadd.f32 %v718_v34, %v717_v31 }
 0x148   : > { %816 = vmatprep.mubr.f32.mxu1 %v719_v35 }
 0x149   : > { %817 = vmatmul.mubr.f32.vlgmr.msra.gmra.mxu1 %v712_v37 }
 0x14a   : > { %893 = vmatprep.mubr.f32.mxu1 %v1630_v0  ;;  %860 = vmatpush1.msra.mxu1 %v823_v40 }
 0x14b   : > { %1035 = vmatprep.subr.mxu1 %v824_v38 }
 0x209   : > { %v1422_v41 = vpop.f32.mrf.mxu1 }
 0x20b   : > { %v1423_v42 = vpop.f32.mrf.mxu1 }
 0x20c   : > { %v1424_v43 = vadd.f32 %v1423_v42, %v1422_v41  ;;  %v1128_v42 = vld [vmem:[%s1960_s7] sm:$0xff] }
 0x20e   : > { %v822_v44 = vmul.f32 0.001953125, %v1424_v43 }
 0x210   : > { %1382 = vmatmul.mubr.msk.f32.vlgmr.msra.gmra.mxu1 %vm825_vm1, %v822_v44 }
 0x211   : > { %1036 = vmatpush1.msra.mxu1 %v823_v40  ;;  %1069 = vmatprep.mubr.f32.mxu1 %v1630_v0 }
 0x2d0   : > { %v895_v45 = vpop.f32.mrf.mxu1 }
 0x2d1   : > { %v903_v46 = vrot.slane %v895_v45, %v1878_v36 }
 0x2d2   : > { %v897_v47 = vpop.f32.mrf.mxu1 }
 0x2d3   : > { %v908_v48 = vsub.f32 %v702_v17, %v903_v46  ;;  %v910_v49 = vsub.f32 %v704_v18, %v903_v46  ;;  %v907_v50 = vrot.slane %v897_v47, %v1878_v36  ;;  %v1082_v17 = vunpack.c.l.s4 %v1631_v16 }
 0x2d5   : > { %v912_v51 = vmul.f32 %v908_v48, %v908_v48  ;;  %v914_v52 = vmul.f32 %v910_v49, %v910_v49  ;;  %v909_v53 = vsub.f32 %v703_v20, %v907_v50  ;;  %v911_v54 = vsub.f32 %v705_v22, %v907_v50 }
 0x2d6   : > { %v1083_v18 = vunpack.c.0.s8 %v1082_v17 }
 0x2d7   : > { %v916_v55 = vadd.f32 %v914_v52, %v912_v51  ;;  %v913_v56 = vmul.f32 %v909_v53, %v909_v53  ;;  %v915_v57 = vmul.f32 %v911_v54, %v911_v54 }
 0x2d8   : > { %v1086_v20 = vsub.s32 %v1083_v18, %v1875_v32 }
 0x2d9   : > { %v917_v58 = vrot.slane %v916_v55, 4  ;;  %v923_v59 = vadd.f32 %v915_v57, %v913_v56 }
 0x2db   : > { %v918_v60 = vadd.f32 %v917_v58, %v916_v55  ;;  %v924_v61 = vrot.slane %v923_v59, 4 }
 0x2dd   : > { %v919_v62 = vrot.slane %v918_v60, 2  ;;  %v925_v63 = vadd.f32 %v924_v61, %v923_v59 }
 0x2df   : > { %v920_v1 = vadd.f32 %v919_v62, %v918_v60  ;;  %v926_v2 = vrot.slane %v925_v63, 2 }
 0x2e1   : > { %v927_v3 = vadd.f32 %v926_v2, %v925_v63  ;;  %v921_v4 = vrot.slane %v920_v1, 1 }
 0x2e3   : > { %v928_v5 = vrot.slane %v927_v3, 1  ;;  %v922_v7 = vadd.f32 %v921_v4, %v920_v1 }
 0x2e5   : > { %v929_v6 = vadd.f32 %v928_v5, %v927_v3 }
 0x2e7   : > { %994 = vmatprep.mubr.f32.mxu0 %v929_v6 }
 0x2e8   : > { %995 = vmatmul.mubr.f32.vlgmr.msra.gmra.mxu0 %v922_v7 }
 0x3a8   : > { %v1457_v8 = vpop.f32.mrf.mxu0 }
 0x3aa   : > { %v1458_v9 = vpop.f32.mrf.mxu0 }
 0x3ab   : > { %v1459_v10 = vadd.f32 %v1458_v9, %v1457_v8 }
 0x3ad   : > { %v1000_v11 = vmul.f32 0.001953125, %v1459_v10 }
 0x3af   : > { %1383 = vmatmul.mubr.msk.f32.vlgmr.msra.gmra.mxu1 %vm825_vm1, %v1000_v11 }
 0x3b0   : > { %1197 = vmatprep.mubr.f32.mxu1 %v1630_v0 }
 0x46f   : > { %v1071_v12 = vpop.f32.mrf.mxu1 }
 0x470   : > { %v1072_v13 = vadd.f32 1e-05, %v1071_v12 }
 0x471   : > { %v1073_v14 = vpop.f32.mrf.mxu1 }
 0x472   : > { %v1074_v15 = vadd.f32 1e-05, %v1073_v14  ;;  %1531 = vrsqrt.f32 %v1072_v13 }
 0x474   : > { %1533 = vrsqrt.f32 %v1074_v15 }
 0x47f   : > { %v1532_v19 = vpop.eup %1531 }
 0x481   : > { %v1534_v21 = vpop.eup %1533 }
 0x482   : > { %v1080_v22 = vcombine.low %v1532_v19, %v1534_v21 }
 0x484   : > { %v1087_v23 = vrot.slane %v1080_v22, %v1086_v20 }
 0x486   : > { %v1094_v25 = vrot.slane %v1087_v23, %v1086_v20 }
 0x488   : > { %v1096_v27 = vmul.f32 %v1094_v25, %v1001_v24 }
 0x48a   : > { %v1105_v28 = vrot.slane %v1096_v27, %v1884_v39  ;;  %v1101_v32 = vrot.slane %v1096_v27, %v1878_v36  ;;  %v1204_v36 = vld [vmem:[%s1961_s8] sm:$0xff] }
 0x48c   : > { %v1111_v31 = vmul.f32 %v1105_v28, %v911_v54  ;;  %v1110_v33 = vmul.f32 %v1101_v32, %v910_v49  ;;  %v1109_v34 = vmul.f32 %v1105_v28, %v909_v53  ;;  %v1108_v35 = vmul.f32 %v1101_v32, %v908_v48 }
 0x48e   : > { %v1127_v37 = vadd.f32 %v1121_v30, %v1111_v31  ;;  %v1126_v38 = vadd.f32 %v1117_v29, %v1110_v33  ;;  %v1125_v40 = vadd.f32 %v1121_v30, %v1109_v34  ;;  %v1124_v41 = vadd.f32 %v1117_v29, %v1108_v35 }
 0x490   : > { %1161 = vmatprep.subr.mxu1 %v1127_v37 }
 0x491   : > { %1162 = vmatpush1.msra.mxu1 %v1126_v38 }
 0x492   : > { %1163 = vmatprep.subr.mxu1 %v1125_v40 }
 0x493   : > { %1164 = vmatpush1.msra.mxu1 %v1124_v41 }
 0x494   : > { %1384 = vmatmul.mubr.msk.f32.vlgmr.msra.gmra.mxu1 %vm1129_vm2, %v1128_v42  ;;  %1236 = vmatprep.subr.mxu1 %v1127_v37 }
 0x495   : > { %1237 = vmatpush1.msra.mxu1 %v1126_v38  ;;  %1272 = vmatprep.mubr.f32.mxu1 %v1630_v0 }
 0x496   : > { %1238 = vmatprep.subr.mxu1 %v1125_v40 }
 0x497   : > { %1239 = vmatpush1.msra.mxu1 %v1124_v41 }
 0x498   : > { %1385 = vmatmul.mubr.msk.f32.vlgmr.msra.gmra.mxu1 %vm1129_vm2, %v1204_v36 }
 0x554   : > { %v1199_v39 = vpop.f32.mrf.mxu1 }
 0x556   : > { %v1201_v43 = vpop.f32.mrf.mxu1 }
 0x558   : > { %v1274_v44 = vpop.f32.mrf.mxu1 }
 0x559   : > { %v1279_v46 = vmax.f32 %v1199_v39, %v1274_v44 }
 0x55a   : > { %v1276_v45 = vpop.f32.mrf.mxu1 }
 0x55b   : > { %v1280_v47 = vmax.f32 %v1201_v43, %v1276_v45 }
 0x55d   : > { %v1281_v0 = vmax.f32 %v1279_v46, %v1280_v47 }
 0x55f   : > { %1282 = vst [vmem:[%s340_s16] sm:$0xff] %v1281_v0 }
 0x560   : > { %1574 = shalt.err (!%p1571_p0)
}
 0x561   : > { %s1575_s29 = scalar_lea.hbm %s1295_s23, 128  ;;  %s1579_s16 = scalar_lea.hbm %s1962_s9, 256 }
 0x562   : > { %p1576_p1 = scmp.ne.s32.totalorder %s1295_s23, %s1575_s29  ;;  %p1580_p4 = scmp.lt.s32.totalorder %s1295_s23, %s1962_s9 }
 0x563   : > { %p1581_p7 = scmp.lt.s32.totalorder %s1579_s16, %s1575_s29 }
 0x564   : > { %p1577_p2 = pnand %p1576_p1, %p1721_p5 }
 0x565   : > { %p1582_p6 = por %p1581_p7, %p1580_p4 }
 0x566   : > { %p1578_p3 = pneg %p1577_p2 }
 0x568   : > { %p1583_p8 = pnand %p1582_p6, %p1578_p3 }
 0x56a   : > { %1586 = shalt.err (!%p1583_p8)
}
 0x56b   : > { %1465 = dma.vmem_to_hbm [thread:$0]  (%p1721_p5), %s1298_s17, 128, %s1295_s23, %s1284_s24  }
 0x56c PF: > { %p1477_p9 = scmp.ge.s32.totalorder %s1625_s12, 2  ;;  %s1309_s25 = sand.u32 1, %s1613_s30  }
 0x56d   : > { %p1966_p10 = scmp.ne.s32.totalorder %s1964_s20, 0  ;;  %s1310_s26 = scalar_lea.sflag [#allocation4], %s1309_s25 }
 0x56f   : > { %p1472_p11 = pnand %p1477_p9, %p1966_p10 }
 0x571   : > { %p1473_p12 = pneg %p1472_p11 }
 0x573   : > { %1608 = dma.done.wait (%p1473_p12), %s1310_s26, 128  }
 0x574   : > { %1610 = vsyncadd (%p1473_p12), %s1310_s26, 4294967168  ;;  %p20_p13 = scmp.ge.s32.totalorder %s1708_s15, 4   ;;  %s1967_s30 = smov %s1617_s10 }
 0x575   : > { %s1968_s10 = smov %s1621_s11  ;;  %s1969_s11 = smov %s1719_s18 }
 0x576   : > { %s1970_s12 = smov %s1708_s15  ;;  %22 = sbr.rel (!%p20_p13) target bundleno = 4 (0x4), region = 98 }
 0x57b   :  { %1315 = vsyncpa [#allocation3], 1 }
 0x57c   :  { %1317 = vsyncpa [#allocation3 + $0x1], 1 }
 0x57d   :  { %1318 = vsyncpa [#allocation4], 1 }
 0x57e   :  { %1320 = vsyncpa [#allocation4 + $0x1], 1 }

</bundles_post_ra>
